<compile_context>
chip_gen: v7x
topology: tpu7x:2x2x1
jax: 0.10.0
libtpu: 0.0.40
codegen_flags: <defaults>
</compile_context>

<pallas_src>
import functools

import jax
import jax.numpy as jnp
from jax import lax
from jax.experimental import pallas as pl
from jax.experimental.pallas import tpu as pltpu


def _vmem_capacity_bytes():
    """Physical VMEM of the local TPU; conservative fallback if unqueryable."""
    try:
        return int(pltpu.get_tpu_info().vmem_capacity_bytes)
    except Exception:
        return 64 * 1024 * 1024  # v7x-sized fallback: safe on every generation


def _plan_tiles(N, C, H, Hd, out_bytes):
    """Pick (q_tile, vmem_limit_bytes) from a per-generation VMEM budget."""
    cap = _vmem_capacity_bytes()
    # ~51 MiB on v7x (64 MiB physical), ~102 MiB on v5e/v6e (128 MiB physical).
    vmem_limit = min(int(cap * 0.80), cap - 8 * 1024 * 1024)
    budget = int(vmem_limit * 0.85)  # headroom for Mosaic internal scratch

    bf16 = 2
    # Per-batch-resident bytes (independent of tq).
    fixed = (2 * N * C * bf16                    # x block (double-buffered)
             + N * Hd * bf16                     # shared-K scratch (single copy)
             + H * N * Hd * bf16                 # per-head V scratch (== N*C)
             + 2 * (2 * C * C * bf16             # wq3 + wp (double-buffered)
                    + C * Hd * bf16              # wk
                    + C * 4))                    # bias
    # Bytes per q-row of the tile.
    per_row = (H * N * (4 + 4 + 2)               # scores f32 + exp f32 + p bf16
               + H * Hd * (2 + 4)                # q2 bf16 + o3 f32
               + C * (2 + 4)                     # head-concat bf16 + y f32
               + 2 * C * out_bytes)              # output block (double-buffered)

    cands = [t for t in range(8, min(N, 512) + 1, 8) if N % t == 0]
    if not cands:                                # N < 8 or no aligned divisor
        cands = [N]
    fit = [t for t in cands if fixed + t * per_row <= budget]
    if not fit:
        # TODO(synk): kv-tiled flash-style variant (online softmax m/l/acc) for
        # long sequences; fail loudly instead of silently blowing VMEM.
        raise ValueError(
            f"MobileMQA single-pass kernel does not fit VMEM for N={N}, C={C}, "
            f"H={H} (budget={budget} bytes); needs a kv-tiled variant.")
    return max(fit), int(vmem_limit)


def _mobile_mqa_kernel(x_ref, wq3_ref, wk_ref, wv3_ref, wp_ref, bp_ref, o_ref,
                       k_scr, v_scr, *, num_heads, head_dim, q_tile, seq_len):
    H, Hd, tq, N = num_heads, head_dim, q_tile, seq_len
    cdt = k_scr.dtype                            # MXU compute dtype (bfloat16)
    qi = pl.program_id(1)

    # ---- once per batch element (qi is the innermost grid axis, so qi==0 runs
    # ---- before every other tile of this batch): shared K + per-head V ------
    @pl.when(qi == 0)
    def _():
        xf = x_ref[0]                                                   # (N, C)
        # Single shared K (MQA): one matmul, one (N, Hd) scratch — never
        # replicated per head (saves VMEM and H store passes; v5e has 1 vst slot).
        k_scr[...] = jnp.dot(xf, wk_ref[...],
                             preferred_element_type=jnp.float32).astype(cdt)
        # Per-head V straight out of the MXU via host-split weights — no lane
        # slicing of the (N, C) activation.
        for h in range(H):                       # static unroll; H is small
            v_scr[h] = jnp.dot(xf, wv3_ref[h],
                               preferred_element_type=jnp.float32).astype(cdt)

    # ---- q projection for this row tile (softmax scale folded into Wq) ------
    row0 = pl.multiple_of(qi * tq, tq)
    x_tile = x_ref[0, pl.ds(row0, tq), :]                               # (tq, C)
    # Per-head q from host-split weights; concatenation along the leading
    # (sublane-aligned) axis is layout-free -> flattened (H*tq, Hd).
    q2 = jnp.concatenate(
        [jnp.dot(x_tile, wq3_ref[h],
                 preferred_element_type=jnp.float32).astype(cdt)
         for h in range(H)], axis=0)                                    # (H*tq, Hd)

    # ---- scores: ONE matmul against the single shared K ---------------------
    s2 = lax.dot_general(q2, k_scr[...], (((1,), (1,)), ((), ())),
                         preferred_element_type=jnp.float32)            # (H*tq, N)

    # ---- softmax statistics in f32; normalization deferred ------------------
    m = jnp.max(s2, axis=-1, keepdims=True)
    # TODO(synk): on v6e/v7x consider bf16 exp (inputs <= 0 after max-subtract)
    # if the single EUP slot becomes the binding unit; keep f32 on v5e.
    p2 = jnp.exp(s2 - m)                                                # f32, unnormalized
    denom = jnp.sum(p2, axis=-1, keepdims=True)                         # (H*tq, 1)

    # ---- attn @ V (batched over heads); scale by 1/denom on (.., Hd) --------
    p3 = p2.reshape(H, tq, N).astype(cdt)                               # free leading-dim split
    o3 = jnp.einsum('hqk,hkd->hqd', p3, v_scr[...],
                    preferred_element_type=jnp.float32)                 # (H, tq, Hd)
    o3 = o3 * pl.reciprocal(denom.reshape(H, tq, 1), approx=True)       # deferred norm

    # ---- output projection: one head-concat relayout + one (tq,C)@(C,C) dot -
    o_cat = jnp.concatenate([o3[h] for h in range(H)], axis=1).astype(cdt)  # (tq, C)
    y = jnp.dot(o_cat, wp_ref[...],
                preferred_element_type=jnp.float32) + bp_ref[...]       # (tq, C) f32
    o_ref[0] = y.astype(o_ref.dtype)


def mobile_mqa(x, wq_t, wk_t, wv_t, wp_t, bp, *, num_heads,
               compute_dtype=jnp.bfloat16):
    """x: (B, N, C); w*_t are PyTorch Linear weights transposed to (in, out); bp: (1, C)."""
    B, N, C = x.shape
    assert C % num_heads == 0
    H = num_heads
    Hd = C // H
    scale = Hd ** (-0.5)
    out_dtype = x.dtype

    tq, vmem_limit = _plan_tiles(N, C, H, Hd, jnp.dtype(out_dtype).itemsize)
    nq = N // tq

    cdt = compute_dtype
    xc = x.astype(cdt)
    # Host-side weight prep: fold softmax scale into Wq; split q/v weights per
    # head so the kernel never lane-slices activations.
    wq3 = (wq_t * scale).reshape(C, H, Hd).transpose(1, 0, 2).astype(cdt)  # (H, C, Hd)
    wk_c = wk_t.astype(cdt)                                                # (C, Hd)
    wv3 = wv_t.reshape(C, H, Hd).transpose(1, 0, 2).astype(cdt)            # (H, C, Hd)
    wp_c = wp_t.astype(cdt)                                                # (C, C)
    bp_f = bp.astype(jnp.float32)                                          # (1, C)

    kernel = functools.partial(_mobile_mqa_kernel, num_heads=H, head_dim=Hd,
                               q_tile=tq, seq_len=N)

    # TODO(synk): pipeline_mode=pl.Buffered(1) on the constant-index weight and
    # x specs would reclaim their second pipeline buffer (extra headroom on v7x).
    full = lambda a: pl.BlockSpec(a.shape, lambda b, qi: (0,) * a.ndim)

    return pl.pallas_call(
        kernel,
        out_shape=jax.ShapeDtypeStruct((B, N, C), out_dtype),
        grid_spec=pltpu.PrefetchScalarGridSpec(
            num_scalar_prefetch=0,
            # qi MUST stay the innermost grid axis: the K/V scratch is filled at
            # qi==0 and reused by every other q tile of the same batch element.
            grid=(B, nq),
            in_specs=[
                # Full sequence per batch element (needed for shared K/V); the
                # block index is constant across qi -> fetched once per b.
                pl.BlockSpec((1, N, C), lambda b, qi: (b, 0, 0)),
                full(wq3), full(wk_c), full(wv3), full(wp_c), full(bp_f),
            ],
            out_specs=pl.BlockSpec((1, tq, C), lambda b, qi: (b, qi, 0)),
            scratch_shapes=[
                pltpu.VMEM((N, Hd), cdt),        # shared K (single copy, MQA)
                pltpu.VMEM((H, N, Hd), cdt),     # per-head V
            ],
        ),
        compiler_params=pltpu.CompilerParams(
            # TODO(synk): for B==1 on v7x (2 TCs), hoist the K/V projections out
            # of the kernel so the qi axis can also be marked "parallel".
            dimension_semantics=("parallel", "arbitrary"),
            vmem_limit_bytes=vmem_limit,
        ),
    )(xc, wq3, wk_c, wv3, wp_c, bp_f)


def mobile_mqa_reference(x, wq_t, wk_t, wv_t, wp_t, bp, *, num_heads):
    """Pure-JAX f32 reference mirroring the PyTorch forward exactly."""
    B, N, C = x.shape
    Hd = C // num_heads
    scale = Hd ** (-0.5)
    q = (x @ wq_t).reshape(B, N, num_heads, Hd).transpose(0, 2, 1, 3)   # (B,H,N,Hd)
    k = (x @ wk_t)[:, None, :, :]                                       # (B,1,N,Hd)
    v = (x @ wv_t).reshape(B, N, num_heads, Hd).transpose(0, 2, 1, 3)   # (B,H,N,Hd)
    attn = jnp.einsum('bhnd,bimd->bhnm', q, k) * scale                  # (B,H,N,N)
    attn = jax.nn.softmax(attn, axis=-1)
    out = jnp.einsum('bhnm,bhmd->bhnd', attn, v)
    out = out.transpose(0, 2, 1, 3).reshape(B, N, C)
    return out @ wp_t + bp[0]


if __name__ == "__main__":
    # Small shapes consistent with the module: x is (B, N, C), C % num_heads == 0.
    B, N, C = 2, 16, 32
    num_heads = 4
    head_dim = C // num_heads

    key = jax.random.PRNGKey(0)
    kx, kq, kk, kv, kp, kb = jax.random.split(key, 6)

    x = jax.random.normal(kx, (B, N, C), dtype=jnp.float32)

    # PyTorch Linear weights are (out_features, in_features); stored here
    # pre-transposed as (in, out) so the kernel computes x @ W.
    wq_t = jax.random.normal(kq, (C, C), dtype=jnp.float32) * 0.1         # q: C -> C
    wk_t = jax.random.normal(kk, (C, head_dim), dtype=jnp.float32) * 0.1  # k: C -> head_dim
    wv_t = jax.random.normal(kv, (C, C), dtype=jnp.float32) * 0.1         # v: C -> C
    wp_t = jax.random.normal(kp, (C, C), dtype=jnp.float32) * 0.1         # proj weight
    bp   = jax.random.normal(kb, (1, C), dtype=jnp.float32) * 0.1         # proj bias

    out = mobile_mqa(x, wq_t, wk_t, wv_t, wp_t, bp, num_heads=num_heads)
    out = jax.block_until_ready(out)

    ref = mobile_mqa_reference(x, wq_t, wk_t, wv_t, wp_t, bp, num_heads=num_heads)
    assert out.shape == (B, N, C)
    # bf16 MXU operands with f32 accumulation -> relaxed tolerance vs f32 reference.
    assert jnp.allclose(out, ref, atol=5e-2, rtol=5e-2), "mismatch vs pure-JAX reference"

    print("KERNEL_OK")
</pallas_src>

<mosaic_0001>
module attributes {stable_mosaic.version = 11 : i64} {
  func.func @_mobile_mqa_kernel(%arg0: i32, %arg1: i32, %arg2: memref<1x16x32xbf16, #tpu.memory_space<vmem>>, %arg3: memref<4x32x8xbf16, #tpu.memory_space<vmem>>, %arg4: memref<32x8xbf16, #tpu.memory_space<vmem>>, %arg5: memref<4x32x8xbf16, #tpu.memory_space<vmem>>, %arg6: memref<32x32xbf16, #tpu.memory_space<vmem>>, %arg7: memref<1x32xf32, #tpu.memory_space<vmem>>, %arg8: memref<1x16x32xf32, #tpu.memory_space<vmem>>, %arg9: memref<16x8xbf16, #tpu.memory_space<vmem>>, %arg10: memref<4x16x8xbf16, #tpu.memory_space<vmem>>) attributes {dimension_semantics = [#tpu.dimension_semantics<parallel>, #tpu.dimension_semantics<arbitrary>], iteration_bounds = array<i64: 2, 1>, scalar_prefetch = 0 : i64, scratch_operands = 2 : i64, tpu.core_type = #tpu.core_type<tc>, window_params = [{transform_indices = @transform_0, window_bounds = array<i64: 1, 16, 32>}, {pipeline_mode = #tpu.pipeline_mode<synchronous>, transform_indices = @transform_1, window_bounds = array<i64: 4, 32, 8>}, {pipeline_mode = #tpu.pipeline_mode<synchronous>, transform_indices = @transform_2, window_bounds = array<i64: 32, 8>}, {pipeline_mode = #tpu.pipeline_mode<synchronous>, transform_indices = @transform_3, window_bounds = array<i64: 4, 32, 8>}, {pipeline_mode = #tpu.pipeline_mode<synchronous>, transform_indices = @transform_4, window_bounds = array<i64: 32, 32>}, {pipeline_mode = #tpu.pipeline_mode<synchronous>, transform_indices = @transform_5, window_bounds = array<i64: 1, 32>}, {transform_indices = @transform_6, window_bounds = array<i64: 1, 16, 32>}]} {
    %c0_i32 = arith.constant 0 : i32
    %0 = arith.cmpi eq, %arg1, %c0_i32 : i32
    %1 = arith.extui %0 : i1 to i32
    %c0_i32_0 = arith.constant 0 : i32
    %2 = arith.cmpi ne, %1, %c0_i32_0 : i32
    scf.if %2 {
      %c0_31 = arith.constant 0 : index
      %c0_32 = arith.constant 0 : index
      %c0_33 = arith.constant 0 : index
      %60 = vector.load %arg2[%c0_31, %c0_32, %c0_33] : memref<1x16x32xbf16, #tpu.memory_space<vmem>>, vector<1x16x32xbf16>
      %61 = vector.shape_cast %60 : vector<1x16x32xbf16> to vector<16x32xbf16>
      %c0_34 = arith.constant 0 : index
      %c0_35 = arith.constant 0 : index
      %62 = vector.load %arg4[%c0_34, %c0_35] : memref<32x8xbf16, #tpu.memory_space<vmem>>, vector<32x8xbf16>
      %cst_36 = arith.constant dense<0.000000e+00> : vector<16x8xf32>
      %63 = tpu.matmul %61, %62, %cst_36 {dimension_numbers = #tpu.dot_dimension_numbers<[1], [0], [0], [1], [0, 0, 1, 1], [], []>} : vector<16x32xbf16>, vector<32x8xbf16>, vector<16x8xf32> -> vector<16x8xf32>
      %64 = arith.truncf %63 : vector<16x8xf32> to vector<16x8xbf16>
      %c0_37 = arith.constant 0 : index
      %c0_38 = arith.constant 0 : index
      %65 = vector.load %arg9[%c0_37, %c0_38] : memref<16x8xbf16, #tpu.memory_space<vmem>>, vector<16x8xbf16>
      tpu.vector_store %arg9[%c0_37, %c0_38], %64 {strides = array<i32>} : memref<16x8xbf16, #tpu.memory_space<vmem>>, vector<16x8xbf16>,
      %c0_39 = arith.constant 0 : index
      %c0_40 = arith.constant 0 : index
      %c0_41 = arith.constant 0 : index
      %66 = vector.load %arg5[%c0_39, %c0_40, %c0_41] : memref<4x32x8xbf16, #tpu.memory_space<vmem>>, vector<1x32x8xbf16>
      %67 = vector.shape_cast %66 : vector<1x32x8xbf16> to vector<32x8xbf16>
      %cst_42 = arith.constant dense<0.000000e+00> : vector<16x8xf32>
      %68 = tpu.matmul %61, %67, %cst_42 {dimension_numbers = #tpu.dot_dimension_numbers<[1], [0], [0], [1], [0, 0, 1, 1], [], []>} : vector<16x32xbf16>, vector<32x8xbf16>, vector<16x8xf32> -> vector<16x8xf32>
      %69 = arith.truncf %68 : vector<16x8xf32> to vector<16x8xbf16>
      %c0_43 = arith.constant 0 : index
      %c0_44 = arith.constant 0 : index
      %c0_45 = arith.constant 0 : index
      %70 = vector.load %arg10[%c0_43, %c0_44, %c0_45] : memref<4x16x8xbf16, #tpu.memory_space<vmem>>, vector<1x16x8xbf16>
      %71 = vector.shape_cast %70 : vector<1x16x8xbf16> to vector<16x8xbf16>
      %72 = vector.shape_cast %69 : vector<16x8xbf16> to vector<1x16x8xbf16>
      tpu.vector_store %arg10[%c0_43, %c0_44, %c0_45], %72 {strides = array<i32>} : memref<4x16x8xbf16, #tpu.memory_space<vmem>>, vector<1x16x8xbf16>,
      %c1_46 = arith.constant 1 : index
      %c0_47 = arith.constant 0 : index
      %c0_48 = arith.constant 0 : index
      %73 = vector.load %arg5[%c1_46, %c0_47, %c0_48] : memref<4x32x8xbf16, #tpu.memory_space<vmem>>, vector<1x32x8xbf16>
      %74 = vector.shape_cast %73 : vector<1x32x8xbf16> to vector<32x8xbf16>
      %cst_49 = arith.constant dense<0.000000e+00> : vector<16x8xf32>
      %75 = tpu.matmul %61, %74, %cst_49 {dimension_numbers = #tpu.dot_dimension_numbers<[1], [0], [0], [1], [0, 0, 1, 1], [], []>} : vector<16x32xbf16>, vector<32x8xbf16>, vector<16x8xf32> -> vector<16x8xf32>
      %76 = arith.truncf %75 : vector<16x8xf32> to vector<16x8xbf16>
      %c1_50 = arith.constant 1 : index
      %c0_51 = arith.constant 0 : index
      %c0_52 = arith.constant 0 : index
      %77 = vector.load %arg10[%c1_50, %c0_51, %c0_52] : memref<4x16x8xbf16, #tpu.memory_space<vmem>>, vector<1x16x8xbf16>
      %78 = vector.shape_cast %77 : vector<1x16x8xbf16> to vector<16x8xbf16>
      %79 = vector.shape_cast %76 : vector<16x8xbf16> to vector<1x16x8xbf16>
      tpu.vector_store %arg10[%c1_50, %c0_51, %c0_52], %79 {strides = array<i32>} : memref<4x16x8xbf16, #tpu.memory_space<vmem>>, vector<1x16x8xbf16>,
      %c2_53 = arith.constant 2 : index
      %c0_54 = arith.constant 0 : index
      %c0_55 = arith.constant 0 : index
      %80 = vector.load %arg5[%c2_53, %c0_54, %c0_55] : memref<4x32x8xbf16, #tpu.memory_space<vmem>>, vector<1x32x8xbf16>
      %81 = vector.shape_cast %80 : vector<1x32x8xbf16> to vector<32x8xbf16>
      %cst_56 = arith.constant dense<0.000000e+00> : vector<16x8xf32>
      %82 = tpu.matmul %61, %81, %cst_56 {dimension_numbers = #tpu.dot_dimension_numbers<[1], [0], [0], [1], [0, 0, 1, 1], [], []>} : vector<16x32xbf16>, vector<32x8xbf16>, vector<16x8xf32> -> vector<16x8xf32>
      %83 = arith.truncf %82 : vector<16x8xf32> to vector<16x8xbf16>
      %c2_57 = arith.constant 2 : index
      %c0_58 = arith.constant 0 : index
      %c0_59 = arith.constant 0 : index
      %84 = vector.load %arg10[%c2_57, %c0_58, %c0_59] : memref<4x16x8xbf16, #tpu.memory_space<vmem>>, vector<1x16x8xbf16>
      %85 = vector.shape_cast %84 : vector<1x16x8xbf16> to vector<16x8xbf16>
      %86 = vector.shape_cast %83 : vector<16x8xbf16> to vector<1x16x8xbf16>
      tpu.vector_store %arg10[%c2_57, %c0_58, %c0_59], %86 {strides = array<i32>} : memref<4x16x8xbf16, #tpu.memory_space<vmem>>, vector<1x16x8xbf16>,
      %c3_60 = arith.constant 3 : index
      %c0_61 = arith.constant 0 : index
      %c0_62 = arith.constant 0 : index
      %87 = vector.load %arg5[%c3_60, %c0_61, %c0_62] : memref<4x32x8xbf16, #tpu.memory_space<vmem>>, vector<1x32x8xbf16>
      %88 = vector.shape_cast %87 : vector<1x32x8xbf16> to vector<32x8xbf16>
      %cst_63 = arith.constant dense<0.000000e+00> : vector<16x8xf32>
      %89 = tpu.matmul %61, %88, %cst_63 {dimension_numbers = #tpu.dot_dimension_numbers<[1], [0], [0], [1], [0, 0, 1, 1], [], []>} : vector<16x32xbf16>, vector<32x8xbf16>, vector<16x8xf32> -> vector<16x8xf32>
      %90 = arith.truncf %89 : vector<16x8xf32> to vector<16x8xbf16>
      %c3_64 = arith.constant 3 : index
      %c0_65 = arith.constant 0 : index
      %c0_66 = arith.constant 0 : index
      %91 = vector.load %arg10[%c3_64, %c0_65, %c0_66] : memref<4x16x8xbf16, #tpu.memory_space<vmem>>, vector<1x16x8xbf16>
      %92 = vector.shape_cast %91 : vector<1x16x8xbf16> to vector<16x8xbf16>
      %93 = vector.shape_cast %90 : vector<16x8xbf16> to vector<1x16x8xbf16>
      tpu.vector_store %arg10[%c3_64, %c0_65, %c0_66], %93 {strides = array<i32>} : memref<4x16x8xbf16, #tpu.memory_space<vmem>>, vector<1x16x8xbf16>,
    } else {
    }
    %c16_i32 = arith.constant 16 : i32
    %3 = arith.muli %arg1, %c16_i32 : i32
    %4 = tpu.assume_multiple %3, 16 : i32
    %c0 = arith.constant 0 : index
    %5 = arith.index_cast %4 : i32 to index
    %c0_1 = arith.constant 0 : index
    %6 = vector.load %arg2[%c0, %5, %c0_1] : memref<1x16x32xbf16, #tpu.memory_space<vmem>>, vector<1x16x32xbf16>
    %7 = vector.shape_cast %6 : vector<1x16x32xbf16> to vector<16x32xbf16>
    %c0_2 = arith.constant 0 : index
    %c0_3 = arith.constant 0 : index
    %c0_4 = arith.constant 0 : index
    %8 = vector.load %arg3[%c0_2, %c0_3, %c0_4] : memref<4x32x8xbf16, #tpu.memory_space<vmem>>, vector<1x32x8xbf16>
    %9 = vector.shape_cast %8 : vector<1x32x8xbf16> to vector<32x8xbf16>
    %cst = arith.constant dense<0.000000e+00> : vector<16x8xf32>
    %10 = tpu.matmul %7, %9, %cst {dimension_numbers = #tpu.dot_dimension_numbers<[1], [0], [0], [1], [0, 0, 1, 1], [], []>} : vector<16x32xbf16>, vector<32x8xbf16>, vector<16x8xf32> -> vector<16x8xf32>
    %11 = arith.truncf %10 : vector<16x8xf32> to vector<16x8xbf16>
    %c1 = arith.constant 1 : index
    %c0_5 = arith.constant 0 : index
    %c0_6 = arith.constant 0 : index
    %12 = vector.load %arg3[%c1, %c0_5, %c0_6] : memref<4x32x8xbf16, #tpu.memory_space<vmem>>, vector<1x32x8xbf16>
    %13 = vector.shape_cast %12 : vector<1x32x8xbf16> to vector<32x8xbf16>
    %cst_7 = arith.constant dense<0.000000e+00> : vector<16x8xf32>
    %14 = tpu.matmul %7, %13, %cst_7 {dimension_numbers = #tpu.dot_dimension_numbers<[1], [0], [0], [1], [0, 0, 1, 1], [], []>} : vector<16x32xbf16>, vector<32x8xbf16>, vector<16x8xf32> -> vector<16x8xf32>
    %15 = arith.truncf %14 : vector<16x8xf32> to vector<16x8xbf16>
    %c2 = arith.constant 2 : index
    %c0_8 = arith.constant 0 : index
    %c0_9 = arith.constant 0 : index
    %16 = vector.load %arg3[%c2, %c0_8, %c0_9] : memref<4x32x8xbf16, #tpu.memory_space<vmem>>, vector<1x32x8xbf16>
    %17 = vector.shape_cast %16 : vector<1x32x8xbf16> to vector<32x8xbf16>
    %cst_10 = arith.constant dense<0.000000e+00> : vector<16x8xf32>
    %18 = tpu.matmul %7, %17, %cst_10 {dimension_numbers = #tpu.dot_dimension_numbers<[1], [0], [0], [1], [0, 0, 1, 1], [], []>} : vector<16x32xbf16>, vector<32x8xbf16>, vector<16x8xf32> -> vector<16x8xf32>
    %19 = arith.truncf %18 : vector<16x8xf32> to vector<16x8xbf16>
    %c3 = arith.constant 3 : index
    %c0_11 = arith.constant 0 : index
    %c0_12 = arith.constant 0 : index
    %20 = vector.load %arg3[%c3, %c0_11, %c0_12] : memref<4x32x8xbf16, #tpu.memory_space<vmem>>, vector<1x32x8xbf16>
    %21 = vector.shape_cast %20 : vector<1x32x8xbf16> to vector<32x8xbf16>
    %cst_13 = arith.constant dense<0.000000e+00> : vector<16x8xf32>
    %22 = tpu.matmul %7, %21, %cst_13 {dimension_numbers = #tpu.dot_dimension_numbers<[1], [0], [0], [1], [0, 0, 1, 1], [], []>} : vector<16x32xbf16>, vector<32x8xbf16>, vector<16x8xf32> -> vector<16x8xf32>
    %23 = arith.truncf %22 : vector<16x8xf32> to vector<16x8xbf16>
    %24 = tpu.concatenate %11, %15, %19, %23 in 0 : vector<16x8xbf16>, vector<16x8xbf16>, vector<16x8xbf16>, vector<16x8xbf16> -> vector<64x8xbf16>
    %c0_14 = arith.constant 0 : index
    %c0_15 = arith.constant 0 : index
    %25 = vector.load %arg9[%c0_14, %c0_15] : memref<16x8xbf16, #tpu.memory_space<vmem>>, vector<16x8xbf16>
    %cst_16 = arith.constant dense<0.000000e+00> : vector<64x16xf32>
    %26 = tpu.matmul %24, %25, %cst_16 {dimension_numbers = #tpu.dot_dimension_numbers<[1], [1], [0], [0], [0, 0, 1, 0], [], []>} : vector<64x8xbf16>, vector<16x8xbf16>, vector<64x16xf32> -> vector<64x16xf32>
    %cst_17 = arith.constant dense<0xFF800000> : vector<64xf32>
    %27 = vector.multi_reduction <maximumf>, %26, %cst_17 [1] : vector<64x16xf32> to vector<64xf32>
    %28 = vector.shape_cast %27 : vector<64xf32> to vector<64x1xf32>
    %29 = vector.broadcast %28 : vector<64x1xf32> to vector<64x16xf32>
    %30 = arith.subf %26, %29 : vector<64x16xf32>
    %31 = math.exp %30 : vector<64x16xf32>
    %cst_18 = arith.constant dense<0.000000e+00> : vector<64xf32>
    %32 = vector.multi_reduction <add>, %31, %cst_18 [1] : vector<64x16xf32> to vector<64xf32>
    %33 = vector.shape_cast %32 : vector<64xf32> to vector<64x1xf32>
    %34 = vector.shape_cast %31 : vector<64x16xf32> to vector<4x16x16xf32>
    %35 = arith.truncf %34 : vector<4x16x16xf32> to vector<4x16x16xbf16>
    %c0_19 = arith.constant 0 : index
    %c0_20 = arith.constant 0 : index
    %c0_21 = arith.constant 0 : index
    %36 = vector.load %arg10[%c0_19, %c0_20, %c0_21] : memref<4x16x8xbf16, #tpu.memory_space<vmem>>, vector<4x16x8xbf16>
    "tpu.trace_start"() <{level = 10 : i32, message = "hqk,hkd->hqd"}> : () -> ()
    %cst_22 = arith.constant dense<0.000000e+00> : vector<4x16x8xf32>
    %37 = tpu.matmul %35, %36, %cst_22 {dimension_numbers = #tpu.dot_dimension_numbers<[2], [1], [1], [2], [0, 0, 0, 1, 1, 2], [0], [0]>} : vector<4x16x16xbf16>, vector<4x16x8xbf16>, vector<4x16x8xf32> -> vector<4x16x8xf32>
    "tpu.trace_stop"() : () -> ()
    %38 = vector.shape_cast %33 : vector<64x1xf32> to vector<4x16x1xf32>
    %39 = tpu.reciprocal %38 {approx = true} : vector<4x16x1xf32> -> vector<4x16x1xf32>
    %40 = vector.broadcast %39 : vector<4x16x1xf32> to vector<4x16x8xf32>
    %41 = arith.mulf %37, %40 : vector<4x16x8xf32>
    %42 = vector.extract_strided_slice %41 {offsets = [0, 0, 0], sizes = [1, 16, 8], strides = [1, 1, 1]} : vector<4x16x8xf32> to vector<1x16x8xf32>
    %43 = vector.shape_cast %42 : vector<1x16x8xf32> to vector<16x8xf32>
    %44 = vector.extract_strided_slice %41 {offsets = [1, 0, 0], sizes = [1, 16, 8], strides = [1, 1, 1]} : vector<4x16x8xf32> to vector<1x16x8xf32>
    %45 = vector.shape_cast %44 : vector<1x16x8xf32> to vector<16x8xf32>
    %46 = vector.extract_strided_slice %41 {offsets = [2, 0, 0], sizes = [1, 16, 8], strides = [1, 1, 1]} : vector<4x16x8xf32> to vector<1x16x8xf32>
    %47 = vector.shape_cast %46 : vector<1x16x8xf32> to vector<16x8xf32>
    %48 = vector.extract_strided_slice %41 {offsets = [3, 0, 0], sizes = [1, 16, 8], strides = [1, 1, 1]} : vector<4x16x8xf32> to vector<1x16x8xf32>
    %49 = vector.shape_cast %48 : vector<1x16x8xf32> to vector<16x8xf32>
    %50 = tpu.concatenate %43, %45, %47, %49 in 1 : vector<16x8xf32>, vector<16x8xf32>, vector<16x8xf32>, vector<16x8xf32> -> vector<16x32xf32>
    %51 = arith.truncf %50 : vector<16x32xf32> to vector<16x32xbf16>
    %c0_23 = arith.constant 0 : index
    %c0_24 = arith.constant 0 : index
    %52 = vector.load %arg6[%c0_23, %c0_24] : memref<32x32xbf16, #tpu.memory_space<vmem>>, vector<32x32xbf16>
    %cst_25 = arith.constant dense<0.000000e+00> : vector<16x32xf32>
    %53 = tpu.matmul %51, %52, %cst_25 {dimension_numbers = #tpu.dot_dimension_numbers<[1], [0], [0], [1], [0, 0, 1, 1], [], []>} : vector<16x32xbf16>, vector<32x32xbf16>, vector<16x32xf32> -> vector<16x32xf32>
    %c0_26 = arith.constant 0 : index
    %c0_27 = arith.constant 0 : index
    %54 = vector.load %arg7[%c0_26, %c0_27] : memref<1x32xf32, #tpu.memory_space<vmem>>, vector<1x32xf32>
    %55 = vector.broadcast %54 : vector<1x32xf32> to vector<16x32xf32>
    %56 = arith.addf %53, %55 : vector<16x32xf32>
    %c0_28 = arith.constant 0 : index
    %c0_29 = arith.constant 0 : index
    %c0_30 = arith.constant 0 : index
    %57 = vector.load %arg8[%c0_28, %c0_29, %c0_30] : memref<1x16x32xf32, #tpu.memory_space<vmem>>, vector<1x16x32xf32>
    %58 = vector.shape_cast %57 : vector<1x16x32xf32> to vector<16x32xf32>
    %59 = vector.shape_cast %56 : vector<16x32xf32> to vector<1x16x32xf32>
    tpu.vector_store %arg8[%c0_28, %c0_29, %c0_30], %59 {strides = array<i32>} : memref<1x16x32xf32, #tpu.memory_space<vmem>>, vector<1x16x32xf32>,
    return
  }
  func.func @transform_0(%arg0: i32, %arg1: i32) -> (i32, i32, i32) {
    %c0_i32 = arith.constant 0 : i32
    %c0_i32_0 = arith.constant 0 : i32
    %c0_i32_1 = arith.constant 0 : i32
    return %arg0, %c0_i32, %c0_i32_0 : i32, i32, i32
  }
  func.func @transform_1(%arg0: i32, %arg1: i32) -> (i32, i32, i32) {
    %c0_i32 = arith.constant 0 : i32
    %c0_i32_0 = arith.constant 0 : i32
    %c0_i32_1 = arith.constant 0 : i32
    %c0_i32_2 = arith.constant 0 : i32
    return %c0_i32, %c0_i32_0, %c0_i32_1 : i32, i32, i32
  }
  func.func @transform_2(%arg0: i32, %arg1: i32) -> (i32, i32) {
    %c0_i32 = arith.constant 0 : i32
    %c0_i32_0 = arith.constant 0 : i32
    %c0_i32_1 = arith.constant 0 : i32
    return %c0_i32, %c0_i32_0 : i32, i32
  }
  func.func @transform_3(%arg0: i32, %arg1: i32) -> (i32, i32, i32) {
    %c0_i32 = arith.constant 0 : i32
    %c0_i32_0 = arith.constant 0 : i32
    %c0_i32_1 = arith.constant 0 : i32
    %c0_i32_2 = arith.constant 0 : i32
    return %c0_i32, %c0_i32_0, %c0_i32_1 : i32, i32, i32
  }
  func.func @transform_4(%arg0: i32, %arg1: i32) -> (i32, i32) {
    %c0_i32 = arith.constant 0 : i32
    %c0_i32_0 = arith.constant 0 : i32
    %c0_i32_1 = arith.constant 0 : i32
    return %c0_i32, %c0_i32_0 : i32, i32
  }
  func.func @transform_5(%arg0: i32, %arg1: i32) -> (i32, i32) {
    %c0_i32 = arith.constant 0 : i32
    %c0_i32_0 = arith.constant 0 : i32
    %c0_i32_1 = arith.constant 0 : i32
    return %c0_i32, %c0_i32_0 : i32, i32
  }
  func.func @transform_6(%arg0: i32, %arg1: i32) -> (i32, i32, i32) {
    %c0_i32 = arith.constant 0 : i32
    %c0_i32_0 = arith.constant 0 : i32
    return %arg0, %arg1, %c0_i32 : i32, i32, i32
  }
}

</mosaic_0001>

<bundles_post_ra>
// kernel: tpu_custom_call.1
= control target key start
LH: loop header
LB: loop body
LE: loop exit
PB: predicated region body
PF: predicated region fallthrough
CT: control target
= control target key end

     0   :  { %11 = vsyncpa [#allocation5], 0  ;;  %s2154_s0 = inlined_call_operand.vmem [shape: bf16[2,16,32], index: 0, kind: input, shape index: {}]   ;;  %s2155_s1 = inlined_call_operand.vmem [shape: bf16[4,32,8], index: 1, kind: input, shape index: {}]   ;;  %s2156_s2 = inlined_call_operand.vmem [shape: bf16[32,8], index: 2, kind: input, shape index: {}]   ;;  %s2157_s3 = inlined_call_operand.vmem [shape: bf16[4,32,8], index: 3, kind: input, shape index: {}]   ;;  %s2158_s4 = inlined_call_operand.vmem [shape: bf16[32,32], index: 4, kind: input, shape index: {}]   ;;  %s2159_s5 = inlined_call_operand.vmem [shape: f32[1,32], index: 5, kind: input, shape index: {}]   ;;  %s2160_s6 = inlined_call_operand.hbm [shape: f32[2,16,32], index: 6, kind: output, shape index: {}]  }
   0x1   :  { %13 = vsyncpa [#allocation5 + $0x1], 0  ;;  %s1871_s21 = smov 0   ;;  %s1873_s22 = smov 0  }
   0x2   :  { %s1875_s23 = smov 0   ;;  %s1877_s24 = smov 0  }
   0x3   :  { %s1879_s25 = smov 0   ;;  %s1881_s26 = smov 0  }
   0x4 LB: > { %s1381_s27 = sadd.s32 4294967295, %s1827_s26   ;;  %s1382_s28 = sadd.s32 4294967294, %s1827_s26   ;;  %s1827_s26 = sphi %s1881_s26, %s19_s26   ;;  %s1823_s25 = sphi %s1879_s25, %s2167_s25   ;;  %s1819_s24 = sphi %s1877_s24, %s2166_s24   ;;  %s1815_s23 = sphi %s1875_s23, %s2165_s23   ;;  %s1811_s22 = sphi %s1873_s22, %s2164_s22   ;;  %s1807_s21 = sphi %s1871_s21, %s2163_s21  }
   0x5   : > { %s31_s29 = sadd.s32 1, %s1823_s25  ;;  %s171_s30 = sadd.s32 1, %s1815_s23 }
   0x6   : > { %p33_p0 = scmp.ge.s32.totalorder %s31_s29, 2  ;;  %p181_p1 = scmp.ne.s32.totalorder %s1815_s23, %s1811_s22 }
   0x7   : > { %p182_p2 = scmp.eq.s32.totalorder %s1381_s27, 1  ;;  %p187_p3 = scmp.ne.s32.totalorder %s1811_s22, %s1807_s21 }
   0x8   : > { %s2169_s29 = smov (%p33_p0, %s31_s29), 0  ;;  %p188_p5 = scmp.eq.s32.totalorder %s1382_s28, 1 }
   0x9   : > { %p1911_p4 = por %p182_p2, %p181_p1  ;;  %s166_s8 = ssub.s32 %s1823_s25, %s2169_s29 }
   0xa   : > { %p1385_p6 = scmp.ge.s32.totalorder %s1827_s26, 1  ;;  %p169_p7 = scmp.eq.s32.totalorder %s166_s8, 0 }
   0xb   : > { %p1918_p8 = por %p188_p5, %p187_p3  ;;  %p229_p9 = scmp.lt.s32.totalorder %s1827_s26, 3 }
   0xc   : > { %s1924_s10 = scalar_select %p169_p7, %s1815_s23, %s171_s30  }
   0xd   : > { %p230_p10 = pnand %p1385_p6, %p229_p9 }
   0xe   : > { %v1695_v0 = vld [vmem:[%s2156_s2] sm:$0xff] (!%p230_p10)   ;;  %v1829_v1 = vmov (!%p230_p10), 0.0   ;;  %v1696_v2 = vld [vmem:[%s2156_s2 + $0x8] sm:$0xff] (!%p230_p10)   ;;  %vm1830_vm0 = vmmov (!%p230_p10), 0   ;;  %p259_p11 = scmp.lt.s32.totalorder (!%p230_p10), %s1819_s24, 1  ;;  %v1699_v5 = vld [vmem:[%s2157_s3 + $0x10] sm:$0xff] (!%p230_p10)  }
   0xf   : > { %233 = sbr.rel (%p230_p10) target bundleno = 1229 (0x4cd), region = 44  ;;  %1504 = vmatprep.subr.bf16.mxu0 (!%p230_p10), %v1829_v1  ;;  %1512 = vmatprep.subr.bf16.mxu1 (!%p230_p10), %v1829_v1  ;;  %v1697_v3 = vld [vmem:[%s2157_s3] sm:$0xff] (!%p230_p10)   ;;  %v1700_v4 = vld [vmem:[%s2157_s3 + $0x8] sm:$0xff] (!%p230_p10)   ;;  %vm293_vm1 = vcmask (!%p230_p10), 261120   ;;  %v1701_v8 = vld [vmem:[%s2157_s3 + $0x18] sm:$0xff] (!%p230_p10)   ;;  %vm339_vm2 = vcmask (!%p230_p10), 64512  }
  0x10   : > { %1505 = vmatpush3.bf16.msra.mxu0 (!%p230_p10), %v1695_v0  ;;  %1508 = vmatprep.mubr.msk.bf16.mxu0 (!%p230_p10), %vm1830_vm0, %v1829_v1  ;;  %v1702_v6 = vld [vmem:[%s2157_s3 + $0x20] sm:$0xff] (!%p230_p10)   ;;  %v1704_v9 = vld [vmem:[%s2157_s3 + $0x28] sm:$0xff] (!%p230_p10)   ;;  %v1703_v10 = vld [vmem:[%s2157_s3 + $0x30] sm:$0xff] (!%p230_p10)   ;;  %vm916_vm3 = vcmask (!%p230_p10), 130048   ;;  %s1831_s15 = smov (!%p230_p10), 16   ;;  %s1832_s16 = smov (!%p230_p10), 8  }
  0x11   : > { %1506 = vmatprep.subr.bf16.mxu0 (!%p230_p10), %v1829_v1  ;;  %1516 = vmatprep.mubr.msk.bf16.mxu1 (!%p230_p10), %vm1830_vm0, %v1829_v1  ;;  %v1706_v11 = vld [vmem:[%s2155_s1] sm:$0xff] (!%p230_p10)   ;;  %v1705_v12 = vld [vmem:[%s2157_s3 + $0x38] sm:$0xff] (!%p230_p10)   ;;  %v1708_v13 = vld [vmem:[%s2155_s1 + $0x8] sm:$0xff] (!%p230_p10)   ;;  %vm1217_vm4 = vcmask (!%p230_p10), 195584   ;;  %s256_s18 = sand.u32 (!%p230_p10), 1, %s1811_s22   ;;  %s1460_s30 = sshll.u32 (!%p230_p10), %s1819_s24, 8 }
  0x12   : > { %1513 = vmatpush3.bf16.msra.mxu1 (!%p230_p10), %v1697_v3  ;;  %v1707_v14 = vld [vmem:[%s2155_s1 + $0x10] sm:$0xff] (!%p230_p10)   ;;  %v1711_v16 = vld [vmem:[%s2155_s1 + $0x20] sm:$0xff] (!%p230_p10)   ;;  %v1710_v17 = vld [vmem:[%s2155_s1 + $0x18] sm:$0xff] (!%p230_p10)   ;;  %s2104_s13 = scalar_lea.hbm (!%p230_p10), %s2160_s6, %s1460_s30 }
  0x13   : > { %1514 = vmatprep.subr.bf16.mxu1 (!%p230_p10), %v1829_v1  ;;  %v1713_v18 = vld [vmem:[%s2155_s1 + $0x28] sm:$0xff] (!%p230_p10)   ;;  %v1712_v19 = vld [vmem:[%s2155_s1 + $0x30] sm:$0xff] (!%p230_p10)   ;;  %v1714_v20 = vld [vmem:[%s2155_s1 + $0x38] sm:$0xff] (!%p230_p10)  }
  0x14   : > { %1507 = vmatpush3.bf16.msra.mxu0 (!%p230_p10), %v1696_v2 }
  0x15   : > { %1520 = vmatprep.subr.bf16.mxu0 (!%p230_p10), %v1829_v1 }
  0x16   : > { %s260_s17 = scalar_select %p259_p11, %s1819_s24, 1  ;;  %1515 = vmatpush3.bf16.msra.mxu1 %v1700_v4 }
  0x17   : > { %1528 = vmatprep.subr.bf16.mxu1 %v1829_v1  ;;  %s2107_s24 = scalar_lea.sflag [#allocation5], %s256_s18 }
  0x18   : > { %s1459_s20 = sshll.u32 %s260_s17, 3  ;;  %s1833_s17 = smov 24  }
  0x19   : > { %s1954_s11 = scalar_lea.vmem %s2154_s0, %s1459_s20 }
  0x1a   : > { %v1698_v7 = vld [vmem:[%s1954_s11] sm:$0xff]  }
  0x1b   : > { %1509 = vmatmul.mubr.msk.bf16.vlgmr.msra.gmra.mrb[0].mxu0 %vm293_vm1, %v1698_v7  ;;  %1517 = vmatmul.mubr.msk.bf16.vlgmr.msra.gmra.mrb[0].mxu1 %vm293_vm1, %v1698_v7  ;;  %v1709_v15 = vld [vmem:[%s1954_s11] sm:$0xff]   ;;  %s1386_s11 = sshll.u32 %s256_s18, 4 }
  0x1c   : > { %1521 = vmatpush3.bf16.msra.mxu0 %v1699_v5  ;;  %1529 = vmatpush3.bf16.msra.mxu1 %v1702_v6  ;;  %s258_s27 = scalar_lea.vmem [#allocation4], %s1386_s11 }
  0x1d   : > { %1522 = vmatprep.subr.bf16.mxu0 %v1829_v1  ;;  %1524 = vmatprep.mubr.msk.bf16.mxu0 %vm1830_vm0, %v1829_v1  ;;  %s1306_s28 = sshll.u32 %s258_s27, 4  ;;  %s2098_s28 = int_to_ptr.vmem [resolvable:$true] %s1306_s28 }
  0x1e   : > { %1530 = vmatprep.subr.bf16.mxu1 %v1829_v1  ;;  %1532 = vmatprep.mubr.msk.bf16.mxu1 %vm1830_vm0, %v1829_v1  ;;  %s1749_s14 = scalar_lea.vmem %s2098_s28, 256 }
  0x1f   : > { %p1750_p12 = scmp.ne.s32.totalorder %s2098_s28, %s1749_s14 }
  0x20   : > { %1523 = vmatpush3.bf16.msra.mxu0 %v1701_v8  ;;  %1531 = vmatpush3.bf16.msra.mxu1 %v1704_v9 }
  0x21   : > { %1536 = vmatprep.subr.bf16.mxu0 %v1829_v1  ;;  %1544 = vmatprep.subr.bf16.mxu1 %v1829_v1  ;;  %p1751_p13 = pnand %p1750_p12, %p1911_p4 }
  0x23   : > { %1525 = vmatmul.mubr.msk.bf16.vlgmr.msra.gmra.mrb[4].mxu0 %vm293_vm1, %v1698_v7  ;;  %1533 = vmatmul.mubr.msk.bf16.vlgmr.msra.gmra.mrb[4].mxu1 %vm293_vm1, %v1698_v7  ;;  %p1752_p0 = pneg %p1751_p13 }
  0x24   : > { %1537 = vmatpush3.bf16.msra.mxu0 %v1703_v10  ;;  %1545 = vmatpush3.bf16.msra.mxu1 %v1706_v11 }
  0x25   : > { %1538 = vmatprep.subr.bf16.mxu0 %v1829_v1  ;;  %1540 = vmatprep.mubr.msk.bf16.mxu0 %vm1830_vm0, %v1829_v1 }
  0x26   : > { %1546 = vmatprep.subr.bf16.mxu1 %v1829_v1  ;;  %1548 = vmatprep.mubr.msk.bf16.mxu1 %vm1830_vm0, %v1829_v1 }
  0x28   : > { %1539 = vmatpush3.bf16.msra.mxu0 %v1705_v12  ;;  %1547 = vmatpush3.bf16.msra.mxu1 %v1708_v13 }
  0x29   : > { %1552 = vmatprep.subr.bf16.mxu0 %v1829_v1  ;;  %1560 = vmatprep.subr.bf16.mxu1 %v1829_v1 }
  0x2b   : > { %1541 = vmatmul.mubr.msk.bf16.vlgmr.msra.gmra.mrb[8].mxu0 %vm293_vm1, %v1698_v7  ;;  %1549 = vmatmul.mubr.msk.bf16.vlgmr.msra.gmra.mrb[8].mxu1 %vm293_vm1, %v1709_v15 }
  0x2c   : > { %1553 = vmatpush3.bf16.msra.mxu0 %v1707_v14  ;;  %1556 = vmatprep.mubr.msk.bf16.mxu0 %vm1830_vm0, %v1829_v1 }
  0x2d   : > { %1554 = vmatprep.subr.bf16.mxu0 %v1829_v1  ;;  %1561 = vmatpush3.bf16.msra.mxu1 %v1711_v16 }
  0x2e   : > { %1564 = vmatprep.mubr.msk.bf16.mxu1 %vm1830_vm0, %v1829_v1  ;;  %1562 = vmatprep.subr.bf16.mxu1 %v1829_v1 }
  0x30   : > { %1555 = vmatpush3.bf16.msra.mxu0 %v1710_v17 }
  0x31   : > { %1568 = vmatprep.subr.bf16.mxu0 %v1829_v1  ;;  %1563 = vmatpush3.bf16.msra.mxu1 %v1713_v18 }
  0x33   : > { %1557 = vmatmul.mubr.msk.bf16.vlgmr.msra.gmra.mrb[12].mxu0 %vm293_vm1, %v1709_v15 }
  0x34   : > { %1569 = vmatpush3.bf16.msra.mxu0 %v1712_v19  ;;  %1572 = vmatprep.mubr.msk.bf16.mxu0 %vm1830_vm0, %v1829_v1 }
  0x35   : > { %1570 = vmatprep.subr.bf16.mxu0 %v1829_v1  ;;  %1565 = vmatmul.mubr.msk.bf16.vlgmr.msra.gmra.mrb[12].mxu1 %vm293_vm1, %v1709_v15 }
  0x38   : > { %1571 = vmatpush3.bf16.msra.mxu0 %v1714_v20 }
  0x39   : > { %1586 = vmatprep.subr.bf16.mxu0 %v1829_v1 }
  0x3b   : > { %1573 = vmatmul.mubr.msk.bf16.vlgmr.msra.gmra.mrb[16].mxu0 %vm293_vm1, %v1709_v15 }
  0x3c   : > { %1588 = vmatprep.mubr.msk.bf16.mxu0 %vm1830_vm0, %v1829_v1 }
  0xee   : > { %v331_v21 = vpop.f32.mrb[0].mxu0  ;;  %v391_v23 = vpop.f32.mrb[0].mxu1 }
  0xef   : > { %v1510_v22 = vpop.f32.mrb[1].mxu0  ;;  %v1518_v25 = vpop.f32.mrb[1].mxu1 }
  0xf0   : > { %v334_v24 = vpop.f32.mrb[2].mxu0  ;;  %v394_v28 = vpop.f32.mrb[2].mxu1 }
  0xf1   : > { %v338_v26 = vpack.c.bf16 %v334_v24, %v331_v21  ;;  %v1511_v27 = vpop.f32.mrb[3].mxu0  ;;  %v398_v29 = vpack.c.bf16 %v394_v28, %v391_v23  ;;  %v1519_v30 = vpop.f32.mrb[3].mxu1 }
  0xf3   : > { %340 = vst.msk [vmem:[#allocation2] sm:$0xff] %vm339_vm2, %v338_v26  ;;  %399 = vst.msk [vmem:[#allocation3] sm:$0xff] %vm339_vm2, %v398_v29 }
  0xf6   : > { %v451_v31 = vpop.f32.mrb[4].mxu0  ;;  %v512_v33 = vpop.f32.mrb[4].mxu1 }
  0xf7   : > { %v1526_v32 = vpop.f32.mrb[5].mxu0  ;;  %v1534_v35 = vpop.f32.mrb[5].mxu1 }
  0xf8   : > { %v454_v34 = vpop.f32.mrb[6].mxu0  ;;  %v515_v38 = vpop.f32.mrb[6].mxu1 }
  0xf9   : > { %v458_v36 = vpack.c.bf16 %v454_v34, %v451_v31  ;;  %v1527_v37 = vpop.f32.mrb[7].mxu0  ;;  %v519_v40 = vpack.c.bf16 %v515_v38, %v512_v33  ;;  %v1535_v41 = vpop.f32.mrb[7].mxu1 }
  0xfa   : > { %v834_v39 = vld [vmem:[#allocation2] sm:$0xff]  ;;  %v993_v43 = vld [vmem:[#allocation3] sm:$0xff] }
  0xfb   : > { %460 = vst.msk [vmem:[#allocation3 + $0x8] sm:$0xff] %vm339_vm2, %v458_v36  ;;  %1618 = vmatprep.subr.msk.bf16.mxu1 %vm339_vm2, %v834_v39  ;;  %v849_v42 = vsel %vm339_vm2, %v834_v39, 0  ;;  %521 = vst.msk [vmem:[#allocation3 + $0x10] sm:$0xff] %vm339_vm2, %v519_v40  ;;  %1587 = vmatpush3.bf16.msra.mxu0 %v993_v43 }
  0xfc   : > { %1577 = vmatpush3.bf16.xpose.msra.mxu1 %v849_v42  ;;  %1592 = vmatprep.subr.bf16.mxu0 %v1829_v1 }
  0xfd   : > { %1598 = vmatprep.subr.bf16.mxu1 %v1829_v1 }
  0xfe   : > { %v573_v44 = vpop.f32.mrb[8].mxu0  ;;  %v649_v46 = vpop.f32.mrb[8].mxu1 }
  0xff   : > { %v1542_v45 = vpop.f32.mrb[9].mxu0  ;;  %v1550_v48 = vpop.f32.mrb[9].mxu1 }
 0x100   : > { %v576_v47 = vpop.f32.mrb[10].mxu0  ;;  %v652_v51 = vpop.f32.mrb[10].mxu1 }
 0x101   : > { %v580_v49 = vpack.c.bf16 %v576_v47, %v573_v44  ;;  %v1543_v50 = vpop.f32.mrb[11].mxu0  ;;  %v656_v52 = vpack.c.bf16 %v652_v51, %v649_v46  ;;  %v1551_v53 = vpop.f32.mrb[11].mxu1 }
 0x102   : > { %v995_v62 = vld [vmem:[#allocation3 + $0x10] sm:$0xff] }
 0x103   : > { %582 = vst.msk [vmem:[#allocation3 + $0x18] sm:$0xff] %vm339_vm2, %v580_v49  ;;  %1578 = vmatprep.mubr.msk.bf16.mxu1 %vm339_vm2, %v656_v52 }
 0x106   : > { %v708_v54 = vpop.f32.mrb[12].mxu0 }
 0x107   : > { %v1558_v55 = vpop.f32.mrb[13].mxu0 }
 0x108   : > { %v711_v56 = vpop.f32.mrb[14].mxu0  ;;  %v767_v57 = vpop.f32.mrb[12].mxu1  ;;  %v994_v55 = vld [vmem:[#allocation3 + $0x8] sm:$0xff] }
 0x109   : > { %v715_v58 = vpack.c.bf16 %v711_v56, %v708_v54  ;;  %v1559_v59 = vpop.f32.mrb[15].mxu0  ;;  %v1566_v60 = vpop.f32.mrb[13].mxu1 }
 0x10a   : > { %v770_v61 = vpop.f32.mrb[14].mxu1 }
 0x10b   : > { %1579 = vmatmul.mubr.msk.bf16.vlgmr.msra.gmra.mrb[16].mxu1 %vm339_vm2, %v715_v58  ;;  %v774_v63 = vpack.c.bf16 %v770_v61, %v767_v57  ;;  %v1567_v0 = vpop.f32.mrb[15].mxu1 }
 0x10c   : > { %1599 = vmatpush3.bf16.msra.mxu1 %v995_v62  ;;  %v996_v0 = vld [vmem:[#allocation3 + $0x18] sm:$0xff] }
 0x10d   : > { %1582 = vmatprep.mubr.msk.bf16.mxu1 %vm339_vm2, %v774_v63  ;;  %1610 = vmatprep.subr.bf16.mxu1 %v1829_v1 }
 0x10e   : > { %v826_v2 = vpop.f32.mrb[16].mxu0 }
 0x10f   : > { %v1574_v3 = vpop.f32.mrb[17].mxu0 }
 0x110   : > { %v829_v4 = vpop.f32.mrb[18].mxu0 }
 0x111   : > { %v833_v5 = vpack.c.bf16 %v829_v4, %v826_v2  ;;  %v1575_v6 = vpop.f32.mrb[19].mxu0 }
 0x113   : > { %1583 = vmatmul.mubr.msk.bf16.gmra.mrb[20].mxu1 %vm339_vm2, %v833_v5 }
 0x114   : > { %1600 = vmatprep.mubr.msk.bf16.mxu1 %vm1830_vm0, %v1829_v1 }
 0x1de   : > { %v1580_v7 = vpop.f32.mrb[16].mxu1 }
 0x1df   : > { %v885_v8 = vpop.f32.mrb[17].mxu1  ;;  %v923_v9 = vsel %vm916_vm3, %v1580_v7, -inf }
 0x1e0   : > { %924 = vmax.xlane.f32.xlu1 %v923_v9  ;;  %v1581_v10 = vpop.f32.mrb[18].mxu1  ;;  %v917_v11 = vsel %vm916_vm3, %v885_v8, -inf }
 0x1e1   : > { %918 = vmax.xlane.f32.xlu0 %v917_v11  ;;  %v888_v12 = vpop.f32.mrb[19].mxu1  ;;  %v926_v13 = vsel %vm916_vm3, %v1581_v10, -inf }
 0x1e2   : > { %v920_v14 = vsel %vm916_vm3, %v888_v12, -inf }
 0x1e4   : > { %927 = vmax.xlane.f32.xlu1 %v926_v13 }
 0x1e5   : > { %921 = vmax.xlane.f32.xlu0 %v920_v14 }
 0x1e6   : > { %v1584_v15 = vpop.f32.mrb[20].mxu1 }
 0x1e7   : > { %v901_v16 = vpop.f32.mrb[21].mxu1  ;;  %v935_v21 = vsel %vm916_vm3, %v1584_v15, -inf }
 0x1e8   : > { %v1585_v17 = vpop.f32.mrb[22].mxu1  ;;  %v929_v18 = vsel %vm916_vm3, %v901_v16, -inf }
 0x1e9   : > { %930 = vmax.xlane.f32.xlu0 %v929_v18  ;;  %v904_v19 = vpop.f32.mrb[23].mxu1  ;;  %v938_v22 = vsel %vm916_vm3, %v1585_v17, -inf }
 0x1ea   : > { %v932_v20 = vsel %vm916_vm3, %v904_v19, -inf }
 0x1eb   : > { %933 = vmax.xlane.f32.xlu1 %v932_v20 }
 0x1ed   : > { %936 = vmax.xlane.f32.xlu0 %v935_v21 }
 0x1ef   : > { %939 = vmax.xlane.f32.xlu1 %v938_v22 }
 0x26d   : > { %v925_v23 = vpop.xlane.xlu1 %924 }
 0x26e   : > { %v943_v24 = vsub.f32 %v1580_v7, %v925_v23  ;;  %v919_v25 = vpop.xlane.xlu0 %918 }
 0x26f   : > { %v941_v26 = vsub.f32 %v885_v8, %v919_v25 }
 0x270   : > { %v953_v27 = vmul.f32 1.442695, %v943_v24 }
 0x271   : > { %v949_v28 = vmul.f32 1.442695, %v941_v26  ;;  %v928_v29 = vpop.xlane.xlu1 %927 }
 0x272   : > { %1717 = vpow2.f32 %v953_v27  ;;  %v944_v30 = vsub.f32 %v1581_v10, %v928_v29  ;;  %v922_v31 = vpop.xlane.xlu0 %921 }
 0x273   : > { %v942_v32 = vsub.f32 %v888_v12, %v922_v31  ;;  %1719 = vpow2.f32 %v949_v28 }
 0x274   : > { %v955_v33 = vmul.f32 1.442695, %v944_v30 }
 0x275   : > { %v951_v34 = vmul.f32 1.442695, %v942_v32 }
 0x276   : > { %1721 = vpow2.f32 %v955_v33  ;;  %v931_v35 = vpop.xlane.xlu0 %930 }
 0x277   : > { %1723 = vpow2.f32 %v951_v34  ;;  %v945_v36 = vsub.f32 %v901_v16, %v931_v35  ;;  %v1716_v34 = vld [vmem:[%s2158_s4 + $0x8] sm:$0xff]  }
 0x278   : > { %v934_v37 = vpop.xlane.xlu1 %933 }
 0x279   : > { %v957_v38 = vmul.f32 1.442695, %v945_v36  ;;  %v946_v39 = vsub.f32 %v904_v19, %v934_v37 }
 0x27a   : > { %v937_v40 = vpop.xlane.xlu0 %936 }
 0x27b   : > { %1725 = vpow2.f32 %v957_v38  ;;  %v959_v41 = vmul.f32 1.442695, %v946_v39  ;;  %v947_v42 = vsub.f32 %v1584_v15, %v937_v40  ;;  %v1715_v15 = vld [vmem:[%s2158_s4] sm:$0xff]  }
 0x27c   : > { %v1718_v43 = vpop.eup %1717  ;;  %v940_v44 = vpop.xlane.xlu1 %939 }
 0x27d   : > { %1727 = vpow2.f32 %v959_v41  ;;  %v961_v45 = vmul.f32 1.442695, %v947_v42  ;;  %v948_v46 = vsub.f32 %v1585_v17, %v940_v44  ;;  %v971_v47 = vsel %vm916_vm3, %v1718_v43, 0.0  ;;  %v1720_v48 = vpop.eup %1719 }
 0x27e   : > { %972 = vadd.xlane.f32.xlu0 %v971_v47  ;;  %v965_v4 = vsel %vm916_vm3, %v1720_v48, 0.0 }
 0x27f   : > { %1729 = vpow2.f32 %v961_v45  ;;  %v963_v49 = vmul.f32 1.442695, %v948_v46 }
 0x280   : > { %v1722_v50 = vpop.eup %1721 }
 0x281   : > { %v1724_v51 = vpop.eup %1723  ;;  %1731 = vpow2.f32 %v963_v49  ;;  %v974_v52 = vsel %vm916_vm3, %v1722_v50, 0.0  ;;  %v990_v53 = vpack.c.bf16 %v1722_v50, %v1718_v43 }
 0x282   : > { %975 = vadd.xlane.f32.xlu1 %v974_v52  ;;  %v989_v54 = vpack.c.bf16 %v1724_v51, %v1720_v48  ;;  %v968_v5 = vsel %vm916_vm3, %v1724_v51, 0.0 }
 0x284   : > { %1589 = vmatmul.mubr.msk.bf16.vlgmr.msra.gmra.mrb[20].mxu0 %vm916_vm3, %v989_v54 }
 0x285   : > { %v1726_v56 = vpop.eup %1725  ;;  %1593 = vmatpush3.bf16.msra.mxu0 %v994_v55  ;;  %1594 = vmatprep.mubr.msk.bf16.mxu0 %vm1830_vm0, %v1829_v1 }
 0x286   : > { %v977_v57 = vsel %vm916_vm3, %v1726_v56, 0.0  ;;  %1604 = vmatprep.subr.bf16.mxu0 %v1829_v1 }
 0x287   : > { %v1728_v58 = vpop.eup %1727  ;;  %978 = vadd.xlane.f32.xlu0 %v977_v57 }
 0x288   : > { %v991_v59 = vpack.c.bf16 %v1728_v58, %v1726_v56  ;;  %v980_v60 = vsel %vm916_vm3, %v1728_v58, 0.0 }
 0x289   : > { %v1730_v61 = vpop.eup %1729  ;;  %981 = vadd.xlane.f32.xlu1 %v980_v60 }
 0x28a   : > { %1601 = vmatmul.mubr.msk.bf16.vlgmr.msra.gmra.mrb[24].mxu1 %vm916_vm3, %v991_v59  ;;  %v983_v62 = vsel %vm916_vm3, %v1730_v61, 0.0 }
 0x28b   : > { %v1732_v63 = vpop.eup %1731  ;;  %984 = vadd.xlane.f32.xlu0 %v983_v62  ;;  %1614 = vmatprep.mubr.msk.bf16.mxu1 %vm1830_vm0, %v1829_v1 }
 0x28c   : > { %1595 = vmatmul.mubr.msk.bf16.vlgmr.msra.gmra.mrb[24].mxu0 %vm916_vm3, %v990_v53  ;;  %v986_v2 = vsel %vm916_vm3, %v1732_v63, 0.0  ;;  %v992_v3 = vpack.c.bf16 %v1732_v63, %v1730_v61  ;;  %1611 = vmatpush3.bf16.msra.mxu1 %v1715_v15 }
 0x28d   : > { %1605 = vmatpush3.bf16.msra.mxu0 %v996_v0  ;;  %987 = vadd.xlane.f32.xlu1 %v986_v2 }
 0x28e   : > { %1606 = vmatprep.mubr.msk.bf16.mxu0 %vm1830_vm0, %v1829_v1  ;;  %1612 = vmatprep.subr.bf16.mxu1 %v1829_v1 }
 0x28f   : > { %966 = vadd.xlane.f32.xlu0 %v965_v4 }
 0x290   : > { %1613 = vmatpush3.bf16.msra.mxu1 %v1716_v34 }
 0x291   : > { %969 = vadd.xlane.f32.xlu1 %v968_v5 }
 0x294   : > { %1607 = vmatmul.mubr.msk.bf16.vlgmr.msra.gmra.mrb[28].mxu0 %vm916_vm3, %v992_v3  ;;  %v1450_v3 = vld [vmem:[%s2159_s5] ss:$0 sm:$0xff] }
 0x30b   : > { %v973_v6 = vpop.xlane.xlu0 %972 }
 0x30f   : > { %v976_v7 = vpop.xlane.xlu1 %975 }
 0x314   : > { %v979_v8 = vpop.xlane.xlu0 %978 }
 0x315   : > { %1733 = vrcp.f32 %v979_v8 }
 0x316   : > { %v982_v9 = vpop.xlane.xlu1 %981 }
 0x317   : > { %1735 = vrcp.f32 %v982_v9 }
 0x318   : > { %1737 = vrcp.f32 %v973_v6  ;;  %v985_v14 = vpop.xlane.xlu0 %984 }
 0x319   : > { %1739 = vrcp.f32 %v976_v7 }
 0x31a   : > { %v988_v16 = vpop.xlane.xlu1 %987  ;;  %1741 = vrcp.f32 %v985_v14 }
 0x31b   : > { %1743 = vrcp.f32 %v988_v16 }
 0x31c   : > { %v967_v44 = vpop.xlane.xlu0 %966 }
 0x31d   : > { %1745 = vrcp.f32 %v967_v44 }
 0x31e   : > { %v970_v45 = vpop.xlane.xlu1 %969 }
 0x31f   : > { %v1734_v18 = vpop.eup %1733  ;;  %1747 = vrcp.f32 %v970_v45 }
 0x321   : > { %v1736_v20 = vpop.eup %1735 }
 0x322   : > { %v1738_v23 = vpop.eup %1737 }
 0x323   : > { %v1740_v28 = vpop.eup %1739 }
 0x324   : > { %v1742_v36 = vpop.eup %1741 }
 0x325   : > { %v1744_v38 = vpop.eup %1743 }
 0x327   : > { %v1746_v47 = vpop.eup %1745 }
 0x329   : > { %v1748_v50 = vpop.eup %1747 }
 0x357   : > { %v1034_v10 = vpop.f32.mrb[20].mxu0 }
 0x358   : > { %v1590_v11 = vpop.f32.mrb[21].mxu0  ;;  %v1181_v52 = vmul.f32 %v1746_v47, %v1034_v10 }
 0x359   : > { %v1037_v12 = vpop.f32.mrb[22].mxu0 }
 0x35a   : > { %v1591_v13 = vpop.f32.mrb[23].mxu0  ;;  %v1182_v53 = vmul.f32 %v1748_v50, %v1037_v12 }
 0x35d   : > { %v1122_v17 = vpop.f32.mrb[24].mxu1 }
 0x35e   : > { %v1602_v19 = vpop.f32.mrb[25].mxu1  ;;  %v1185_v24 = vmul.f32 %v1734_v18, %v1122_v17 }
 0x35f   : > { %v1078_v21 = vpop.f32.mrb[24].mxu0  ;;  %v1125_v22 = vpop.f32.mrb[26].mxu1 }
 0x360   : > { %v1186_v25 = vmul.f32 %v1736_v20, %v1125_v22  ;;  %v1596_v26 = vpop.f32.mrb[25].mxu0  ;;  %v1603_v27 = vpop.f32.mrb[27].mxu1  ;;  %v1183_v30 = vmul.f32 %v1738_v23, %v1078_v21 }
 0x361   : > { %v1081_v29 = vpop.f32.mrb[26].mxu0 }
 0x362   : > { %v1685_v31 = vpack.i.bf16 %v1186_v25, %v1185_v24  ;;  %v1184_v32 = vmul.f32 %v1740_v28, %v1081_v29  ;;  %v1597_v33 = vpop.f32.mrb[27].mxu0 }
 0x364   : > { %v1680_v1 = vpack.i.bf16 %v1184_v32, %v1183_v30  ;;  %1686 = vrot.lane.b32.xlu1 %v1685_v31, %s1831_s15  ;;  %s1834_s15 = smov [#allocation4]  }
 0x366   : > { %1681 = vrot.lane.b32.xlu0 %v1680_v1, %s1832_s16 }
 0x367   : > { %v1166_v35 = vpop.f32.mrb[28].mxu0 }
 0x368   : > { %v1608_v37 = vpop.f32.mrb[29].mxu0  ;;  %v1187_v40 = vmul.f32 %v1742_v36, %v1166_v35 }
 0x369   : > { %v1169_v39 = vpop.f32.mrb[30].mxu0 }
 0x36a   : > { %v1188_v41 = vmul.f32 %v1744_v38, %v1169_v39  ;;  %v1609_v42 = vpop.f32.mrb[31].mxu0 }
 0x36c   : > { %v1690_v43 = vpack.i.bf16 %v1188_v41, %v1187_v40 }
 0x36e   : > { %1691 = vrot.lane.b32.xlu1 %v1690_v43, %s1833_s17  ;;  %s1753_s17 = sshll.u32 %s1834_s15, 4  ;;  %s1754_s17 = int_to_ptr.vmem [resolvable:$false] %s1753_s17 }
 0x36f   : > { %s1755_s11 = scalar_lea.vmem %s1754_s17, 512  ;;  %p1756_p1 = scmp.lt.s32.totalorder %s2098_s28, %s1754_s17 }
 0x370   : > { %p1757_p2 = scmp.lt.s32.totalorder %s1755_s11, %s1749_s14 }
 0x372   : > { %p1758_p3 = por %p1757_p2, %p1756_p1 }
 0x374   : > { %p1759_p5 = pnand %p1758_p3, %p1752_p0 }
 0x3d6   : > { %v1687_v51 = vpop.permute.xlu1 %1686 }
 0x3d7   : > { %v1689_v56 = vunpack.i.h.bf16 %v1687_v51  ;;  %v1688_v57 = vunpack.i.l.bf16 %v1687_v51 }
 0x3d8   : > { %v1682_v46 = vpop.permute.xlu0 %1681 }
 0x3d9   : > { %v1684_v48 = vunpack.i.h.bf16 %v1682_v46  ;;  %v1683_v49 = vunpack.i.l.bf16 %v1682_v46 }
 0x3db   : > { %v1214_v54 = vsel %vm339_vm2, %v1182_v53, %v1684_v48  ;;  %v1213_v55 = vsel %vm339_vm2, %v1181_v52, %v1683_v49 }
 0x3dc   : > { %v1215_v61 = vsel %vm916_vm3, %v1213_v55, %v1688_v57  ;;  %v1216_v62 = vsel %vm916_vm3, %v1214_v54, %v1689_v56 }
 0x3e0   : > { %v1692_v58 = vpop.permute.xlu1 %1691 }
 0x3e1   : > { %v1694_v59 = vunpack.i.h.bf16 %v1692_v58  ;;  %v1693_v60 = vunpack.i.l.bf16 %v1692_v58 }
 0x3e3   : > { %v1219_v63 = vsel %vm1217_vm4, %v1216_v62, %v1694_v59  ;;  %v1218_v0 = vsel %vm1217_vm4, %v1215_v61, %v1693_v60 }
 0x3e4   : > { %v1220_v2 = vpack.c.bf16 %v1219_v63, %v1218_v0 }
 0x3e6   : > { %1615 = vmatmul.mubr.msk.bf16.vlgmr.msra.gmra.mrb[28].mxu1 %vm293_vm1, %v1220_v2 }
 0x4b9   : > { %v1281_v4 = vpop.f32.mrb[28].mxu1 }
 0x4ba   : > { %v1282_v5 = vadd.f32 %v1450_v3, %v1281_v4  ;;  %v1616_v6 = vpop.f32.mrb[29].mxu1 }
 0x4bb   : > { %v1284_v7 = vpop.f32.mrb[30].mxu1 }
 0x4bc   : > { %1288 = vst.msk [vmem:[%s258_s27] sm:$0xff] %vm293_vm1, %v1282_v5  ;;  %v1285_v8 = vadd.f32 %v1450_v3, %v1284_v7  ;;  %v1617_v9 = vpop.f32.mrb[31].mxu1 }
 0x4be   : > { %1289 = vst.msk [vmem:[%s258_s27 + $0x8] sm:$0xff] %vm293_vm1, %v1285_v8 }
 0x4bf   : > { %1762 = shalt.err (!%p1759_p5)
}
 0x4c0   : > { %s1763_s18 = scalar_lea.hbm %s2104_s13, 256  ;;  %s1767_s27 = scalar_lea.hbm %s2160_s6, 512 }
 0x4c1   : > { %p1764_p6 = scmp.ne.s32.totalorder %s2104_s13, %s1763_s18  ;;  %p1768_p10 = scmp.lt.u32.totalorder %s2104_s13, %s2160_s6 }
 0x4c2   : > { %p1769_p11 = scmp.lt.u32.totalorder %s1767_s27, %s1763_s18  ;;  %p1771_p13 = scmp.lt.u32.totalorder %s1763_s18, %s2104_s13 }
 0x4c3   : > { %p1765_p7 = pnand %p1764_p6, %p1911_p4 }
 0x4c4   : > { %p1770_p12 = por %p1769_p11, %p1768_p10 }
 0x4c5   : > { %p1766_p9 = pneg %p1765_p7 }
 0x4c6   : > { %p1772_p0 = por %p1771_p13, %p1770_p12 }
 0x4c8   : > { %p1773_p1 = pnand %p1772_p0, %p1766_p9 }
 0x4ca   : > { %1776 = shalt.err (!%p1773_p1)
}
 0x4cb   : > { %s1835_s12 = smov 128  }
 0x4cc   : > { %1619 = dma.vmem_to_hbm [thread:$0]  (%p1911_p4), %s2098_s28, 256, %s2104_s13, %s2107_s24, %s1835_s12, %s1835_s12, %s1832_s16  }
 0x4cd PF: > { %p1625_p2 = scmp.ge.s32.totalorder %s1827_s26, 2  ;;  %s1321_s14 = sand.u32 1, %s1807_s21  }
 0x4ce   : > { %s1322_s15 = scalar_lea.sflag [#allocation5], %s1321_s14 }
 0x4cf   : > { %p1622_p3 = pnand %p1625_p2, %p1918_p8 }
 0x4d1   : > { %1802 = dma.done.wait (!%p1622_p3), %s1322_s15, 256  }
 0x4d2   : > { %1804 = vsyncadd (!%p1622_p3), %s1322_s15, 4294967040  ;;  %s19_s26 = sadd.s32 1, %s1827_s26   ;;  %s2163_s21 = smov %s1811_s22 }
 0x4d3   : > { %p16_p5 = scmp.ge.s32.totalorder %s19_s26, 4   ;;  %s2164_s22 = smov %s1815_s23 }
 0x4d4   : > { %s2165_s23 = smov %s1924_s10  ;;  %s2166_s24 = smov %s1823_s25 }
 0x4d5   : > { %s2167_s25 = smov %s2169_s29  ;;  %18 = sbr.rel (!%p16_p5) target bundleno = 4 (0x4), region = 93 }
 0x4dc   :  { %1327 = vsyncpa [#allocation5], 1 }
 0x4dd   :  { %1329 = vsyncpa [#allocation5 + $0x1], 1 }

</bundles_post_ra>
